<compile_context>
chip_gen: v7x
topology: tpu7x:2x2x1
jax: 0.10.0
libtpu: 0.0.40
codegen_flags: <defaults>
</compile_context>

<pallas_src>
import math
from functools import partial

import jax
import jax.numpy as jnp
from jax import lax
from jax.experimental import pallas as pl
from jax.experimental.pallas import tpu as pltpu


def _mha_kernel(q_ref, k_ref, v_ref, w_ref, b_ref, o_ref, *,
                n_heads, d_feature, seq_len, batch_tile):
    H, F, S, bb = n_heads, d_feature, seq_len, batch_tile
    D = H * F                                    # == d_model (packed-slab layout)

    # ---- fused-across-heads projections over all bb*S rows (one matmul each).
    # (bb, S, D) f32 -> (bb*S, D): leading-dim merge, layout-free (S % 8 == 0).
    q2 = q_ref[...].reshape(bb * S, D).astype(jnp.bfloat16)
    k2 = k_ref[...].reshape(bb * S, D).astype(jnp.bfloat16)
    v2 = v_ref[...].reshape(bb * S, D).astype(jnp.bfloat16)

    # Weight slab is bf16; biases f32; MXU accumulates in f32.
    # 1/sqrt(d_k) is already folded into the Q-path weights/bias.
    Q = (jnp.dot(q2, w_ref[0], preferred_element_type=jnp.float32)
         + b_ref[0:1, :]).reshape(bb, S, D)
    K = (jnp.dot(k2, w_ref[1], preferred_element_type=jnp.float32)
         + b_ref[1:2, :]).reshape(bb, S, D)
    V = (jnp.dot(v2, w_ref[2], preferred_element_type=jnp.float32)
         + b_ref[2:3, :]).reshape(bb, S, D)

    # head_mask[h, c] = 1 iff packed column c belongs to head h (head-major cols).
    col = lax.broadcasted_iota(jnp.int32, (H, D), 1)
    row = lax.broadcasted_iota(jnp.int32, (H, D), 0)
    head_mask = ((col >= row * F) & (col < (row + 1) * F)).astype(jnp.float32)
    mask3 = head_mask[:, None, :]                # (H, 1, D)

    w0 = w_ref[3]                                # (D, D) bf16
    b0 = b_ref[3:4, :]                           # (1, D) f32

    # Tiny static loop over the batch rows of this grid step (attention must not
    # mix batch rows); the projections above stay fused across it.
    for i in range(bb):
        Qb, Kb, Vb = Q[i], K[i], V[i]            # (S, D) f32

        # K replicated per head with non-head columns zeroed: a single
        # (H*S, D) x (S, D) contraction over the feature axis yields all heads'
        # K_h @ Q_h^T score blocks stacked along the rows.
        K_exp = (Kb[None, :, :] * mask3).reshape(H * S, D).astype(jnp.bfloat16)
        scores = lax.dot_general(K_exp, Qb.astype(jnp.bfloat16),
                                 (((1,), (1,)), ((), ())),
                                 preferred_element_type=jnp.float32)   # (H*S, S)

        # softmax over the last axis (query positions), f32 math.
        m = jnp.max(scores, axis=-1, keepdims=True)
        e = jnp.exp(scores - m)
        A = e * pl.reciprocal(jnp.sum(e, axis=-1, keepdims=True), approx=True)

        # A @ V for every head at once; zero non-head columns before W_0.
        AV = jnp.dot(A.astype(jnp.bfloat16), Vb.astype(jnp.bfloat16),
                     preferred_element_type=jnp.float32)               # (H*S, D)
        AVm = ((AV.reshape(H, S, D) * mask3)
               .reshape(H * S, D).astype(jnp.bfloat16))
        per_head = jnp.dot(AVm, w0, preferred_element_type=jnp.float32)  # (H*S, D)

        # concat(heads) @ W_0 == sum over heads of the per-head contributions.
        o_ref[i] = jnp.sum(per_head.reshape(H, S, D), axis=0) + b0


def _default_batch_tile(batch_size):
    """Batch rows per grid step.

    v7x has 2 TensorCores per chip: keep >= 2 parallel grid steps so both get
    work (bb = B // 2).  v5e / v6e have a single TensorCore, so grid=(B,) is
    just a serial loop with per-step pipeline overhead: collapse to one grid
    step (bb = B), which also quadruples the matmul M dim feeding the MXU.
    """
    try:
        kind = jax.devices()[0].device_kind.lower()
    except Exception:
        kind = ""
    if "v7" in kind and batch_size >= 2:
        bb = max(1, batch_size // 2)
        return bb if batch_size % bb == 0 else 1
    return batch_size


def multihead_attention_forward(queries, keys, values, params, *,
                                n_heads, d_feature, batch_tile=None):
    B, S, D = queries.shape
    HF = n_heads * d_feature
    assert HF == D, "packed-slab layout assumes n_heads * d_feature == d_model"

    bb = _default_batch_tile(B) if batch_tile is None else batch_tile
    assert B % bb == 0, "batch must be divisible by the batch tile"

    inv_scale = 1.0 / math.sqrt(d_feature)

    def head_major(w):                    # (H, D, F) -> (D, H*F) head-major cols
        return jnp.transpose(w, (1, 0, 2)).reshape(D, HF)

    # Fold 1/sqrt(d_k) into the Q path in f32, THEN cast the slab to bf16.
    wq = head_major(params["wq"]) * inv_scale
    wk = head_major(params["wk"])
    wv = head_major(params["wv"])
    w0 = params["w0"]                                             # (H*F, D)
    w_slab = jnp.stack([wq, wk, wv, w0], axis=0).astype(jnp.bfloat16)  # (4, D, D)

    bq = params["bq"].reshape(HF) * inv_scale
    bk = params["bk"].reshape(HF)
    bv = params["bv"].reshape(HF)
    b0 = params["b0"]
    b_slab = jnp.stack([bq, bk, bv, b0], axis=0).astype(jnp.float32)   # (4, D)

    act_spec = pl.BlockSpec((bb, S, D), lambda i: (i, 0, 0))

    flops = B * (8 * S * D * D + 4 * n_heads * S * S * d_feature)
    bytes_accessed = 4 * B * S * D * 4 + 4 * D * D * 2 + 4 * D * 4
    cost = pl.CostEstimate(flops=flops,
                           transcendentals=B * n_heads * S * S,
                           bytes_accessed=bytes_accessed)

    kernel = partial(_mha_kernel, n_heads=n_heads, d_feature=d_feature,
                     seq_len=S, batch_tile=bb)
    return pl.pallas_call(
        kernel,
        out_shape=jax.ShapeDtypeStruct((B, S, D), jnp.float32),
        grid=(B // bb,),
        in_specs=[act_spec, act_spec, act_spec,
                  pl.BlockSpec((4, D, D), lambda i: (0, 0, 0)),
                  pl.BlockSpec((4, D), lambda i: (0, 0))],
        out_specs=act_spec,
        compiler_params=pltpu.CompilerParams(
            dimension_semantics=("parallel",),
            vmem_limit_bytes=32 * 1024 * 1024),
        cost_estimate=cost,
    )(queries, keys, values, w_slab, b_slab)


# ------------------------------ pure-JAX reference ------------------------------
def multihead_attention_reference(queries, keys, values, params, *, n_heads, d_feature):
    p = params

    def one(qb, kb, vb):
        heads = []
        for h in range(n_heads):
            Q = qb @ p["wq"][h] + p["bq"][h]
            K = kb @ p["wk"][h] + p["bk"][h]
            V = vb @ p["wv"][h] + p["bv"][h]
            s = (K @ Q.T) / math.sqrt(d_feature)      # d_k = K.size(-1) = d_feature
            a = jax.nn.softmax(s, axis=-1)
            heads.append(a @ V)
        x = jnp.concatenate(heads, axis=-1)
        return x @ p["w0"] + p["b0"]

    return jax.vmap(one)(queries, keys, values)


# ------------------------------------ main --------------------------------------
if __name__ == "__main__":
    B, S = 2, 8
    d_model, d_feature, n_heads = 32, 8, 4        # n_heads * d_feature == d_model

    key = jax.random.PRNGKey(0)
    ks = jax.random.split(key, 12)

    def rnd(k, shape, scale=0.1):
        return jax.random.normal(k, shape, dtype=jnp.float32) * scale

    params = {
        # stacked per-head projections, [in, out] layout (transposed vs PyTorch)
        "wq": rnd(ks[0], (n_heads, d_model, d_feature)),
        "bq": rnd(ks[1], (n_heads, d_feature)),
        "wk": rnd(ks[2], (n_heads, d_model, d_feature)),
        "bk": rnd(ks[3], (n_heads, d_feature)),
        "wv": rnd(ks[4], (n_heads, d_model, d_feature)),
        "bv": rnd(ks[5], (n_heads, d_feature)),
        "w0": rnd(ks[6], (n_heads * d_feature, d_model)),
        "b0": rnd(ks[7], (d_model,)),
    }

    queries = rnd(ks[8], (B, S, d_model), scale=1.0)
    keys_in = rnd(ks[9], (B, S, d_model), scale=1.0)
    values_in = rnd(ks[10], (B, S, d_model), scale=1.0)

    out = multihead_attention_forward(queries, keys_in, values_in, params,
                                      n_heads=n_heads, d_feature=d_feature)
    out = jax.block_until_ready(out)

    ref = multihead_attention_reference(queries, keys_in, values_in, params,
                                        n_heads=n_heads, d_feature=d_feature)
    ref = jax.block_until_ready(ref)

    assert out.shape == (B, S, d_model)
    # Tolerance accounts for bf16-fed MXU matmuls (f32 accumulation) and the EUP
    # approximate reciprocal in the in-kernel softmax normalization.
    assert jnp.allclose(out, ref, atol=5e-2, rtol=5e-2), "Pallas output mismatch"
    print("KERNEL_OK")
</pallas_src>

<mosaic_0001>
module attributes {stable_mosaic.version = 11 : i64} {
  func.func @_mha_kernel(%arg0: i32, %arg1: memref<2x8x32xf32, #tpu.memory_space<vmem>>, %arg2: memref<2x8x32xf32, #tpu.memory_space<vmem>>, %arg3: memref<2x8x32xf32, #tpu.memory_space<vmem>>, %arg4: memref<4x32x32xbf16, #tpu.memory_space<vmem>>, %arg5: memref<4x32xf32, #tpu.memory_space<vmem>>, %arg6: memref<2x8x32xf32, #tpu.memory_space<vmem>>) attributes {dimension_semantics = [#tpu.dimension_semantics<parallel>], iteration_bounds = array<i64: 1>, scalar_prefetch = 0 : i64, scratch_operands = 0 : i64, tpu.core_type = #tpu.core_type<tc>, window_params = [{transform_indices = @transform_0, window_bounds = array<i64: 2, 8, 32>}, {transform_indices = @transform_1, window_bounds = array<i64: 2, 8, 32>}, {transform_indices = @transform_2, window_bounds = array<i64: 2, 8, 32>}, {pipeline_mode = #tpu.pipeline_mode<synchronous>, transform_indices = @transform_3, window_bounds = array<i64: 4, 32, 32>}, {pipeline_mode = #tpu.pipeline_mode<synchronous>, transform_indices = @transform_4, window_bounds = array<i64: 4, 32>}, {transform_indices = @transform_5, window_bounds = array<i64: 2, 8, 32>}]} {
    %c0 = arith.constant 0 : index
    %c0_0 = arith.constant 0 : index
    %c0_1 = arith.constant 0 : index
    %0 = vector.load %arg1[%c0, %c0_0, %c0_1] : memref<2x8x32xf32, #tpu.memory_space<vmem>>, vector<2x8x32xf32>
    %1 = vector.shape_cast %0 : vector<2x8x32xf32> to vector<16x32xf32>
    %2 = arith.truncf %1 : vector<16x32xf32> to vector<16x32xbf16>
    %c0_2 = arith.constant 0 : index
    %c0_3 = arith.constant 0 : index
    %c0_4 = arith.constant 0 : index
    %3 = vector.load %arg2[%c0_2, %c0_3, %c0_4] : memref<2x8x32xf32, #tpu.memory_space<vmem>>, vector<2x8x32xf32>
    %4 = vector.shape_cast %3 : vector<2x8x32xf32> to vector<16x32xf32>
    %5 = arith.truncf %4 : vector<16x32xf32> to vector<16x32xbf16>
    %c0_5 = arith.constant 0 : index
    %c0_6 = arith.constant 0 : index
    %c0_7 = arith.constant 0 : index
    %6 = vector.load %arg3[%c0_5, %c0_6, %c0_7] : memref<2x8x32xf32, #tpu.memory_space<vmem>>, vector<2x8x32xf32>
    %7 = vector.shape_cast %6 : vector<2x8x32xf32> to vector<16x32xf32>
    %8 = arith.truncf %7 : vector<16x32xf32> to vector<16x32xbf16>
    %c0_8 = arith.constant 0 : index
    %c0_9 = arith.constant 0 : index
    %c0_10 = arith.constant 0 : index
    %9 = vector.load %arg4[%c0_8, %c0_9, %c0_10] : memref<4x32x32xbf16, #tpu.memory_space<vmem>>, vector<1x32x32xbf16>
    %10 = vector.shape_cast %9 : vector<1x32x32xbf16> to vector<32x32xbf16>
    %cst = arith.constant dense<0.000000e+00> : vector<16x32xf32>
    %11 = tpu.matmul %2, %10, %cst {dimension_numbers = #tpu.dot_dimension_numbers<[1], [0], [0], [1], [0, 0, 1, 1], [], []>} : vector<16x32xbf16>, vector<32x32xbf16>, vector<16x32xf32> -> vector<16x32xf32>
    %c0_11 = arith.constant 0 : index
    %c0_12 = arith.constant 0 : index
    %12 = vector.load %arg5[%c0_11, %c0_12] : memref<4x32xf32, #tpu.memory_space<vmem>>, vector<1x32xf32>
    %13 = vector.broadcast %12 : vector<1x32xf32> to vector<16x32xf32>
    %14 = arith.addf %11, %13 : vector<16x32xf32>
    %15 = vector.shape_cast %14 : vector<16x32xf32> to vector<2x8x32xf32>
    %c1 = arith.constant 1 : index
    %c0_13 = arith.constant 0 : index
    %c0_14 = arith.constant 0 : index
    %16 = vector.load %arg4[%c1, %c0_13, %c0_14] : memref<4x32x32xbf16, #tpu.memory_space<vmem>>, vector<1x32x32xbf16>
    %17 = vector.shape_cast %16 : vector<1x32x32xbf16> to vector<32x32xbf16>
    %cst_15 = arith.constant dense<0.000000e+00> : vector<16x32xf32>
    %18 = tpu.matmul %5, %17, %cst_15 {dimension_numbers = #tpu.dot_dimension_numbers<[1], [0], [0], [1], [0, 0, 1, 1], [], []>} : vector<16x32xbf16>, vector<32x32xbf16>, vector<16x32xf32> -> vector<16x32xf32>
    %c1_16 = arith.constant 1 : index
    %c0_17 = arith.constant 0 : index
    %19 = vector.load %arg5[%c1_16, %c0_17] : memref<4x32xf32, #tpu.memory_space<vmem>>, vector<1x32xf32>
    %20 = vector.broadcast %19 : vector<1x32xf32> to vector<16x32xf32>
    %21 = arith.addf %18, %20 : vector<16x32xf32>
    %22 = vector.shape_cast %21 : vector<16x32xf32> to vector<2x8x32xf32>
    %c2 = arith.constant 2 : index
    %c0_18 = arith.constant 0 : index
    %c0_19 = arith.constant 0 : index
    %23 = vector.load %arg4[%c2, %c0_18, %c0_19] : memref<4x32x32xbf16, #tpu.memory_space<vmem>>, vector<1x32x32xbf16>
    %24 = vector.shape_cast %23 : vector<1x32x32xbf16> to vector<32x32xbf16>
    %cst_20 = arith.constant dense<0.000000e+00> : vector<16x32xf32>
    %25 = tpu.matmul %8, %24, %cst_20 {dimension_numbers = #tpu.dot_dimension_numbers<[1], [0], [0], [1], [0, 0, 1, 1], [], []>} : vector<16x32xbf16>, vector<32x32xbf16>, vector<16x32xf32> -> vector<16x32xf32>
    %c2_21 = arith.constant 2 : index
    %c0_22 = arith.constant 0 : index
    %26 = vector.load %arg5[%c2_21, %c0_22] : memref<4x32xf32, #tpu.memory_space<vmem>>, vector<1x32xf32>
    %27 = vector.broadcast %26 : vector<1x32xf32> to vector<16x32xf32>
    %28 = arith.addf %25, %27 : vector<16x32xf32>
    %29 = vector.shape_cast %28 : vector<16x32xf32> to vector<2x8x32xf32>
    %30 = tpu.iota {dimensions = array<i32: 1>} : vector<4x32xi32>
    %31 = tpu.iota {dimensions = array<i32: 0>} : vector<4x32xi32>
    %c8_i32 = arith.constant 8 : i32
    %32 = vector.broadcast %c8_i32 : i32 to vector<4x32xi32>
    %33 = arith.muli %31, %32 : vector<4x32xi32>
    %34 = arith.cmpi sge, %30, %33 : vector<4x32xi32>
    %c1_i32 = arith.constant 1 : i32
    %35 = vector.broadcast %c1_i32 : i32 to vector<4x32xi32>
    %36 = arith.addi %31, %35 : vector<4x32xi32>
    %c8_i32_23 = arith.constant 8 : i32
    %37 = vector.broadcast %c8_i32_23 : i32 to vector<4x32xi32>
    %38 = arith.muli %36, %37 : vector<4x32xi32>
    %39 = arith.cmpi slt, %30, %38 : vector<4x32xi32>
    %40 = arith.andi %34, %39 : vector<4x32xi1>
    %41 = arith.extui %40 : vector<4x32xi1> to vector<4x32xi32>
    %42 = arith.sitofp %41 : vector<4x32xi32> to vector<4x32xf32>
    %43 = vector.shape_cast %42 : vector<4x32xf32> to vector<4x1x32xf32>
    %c3 = arith.constant 3 : index
    %c0_24 = arith.constant 0 : index
    %c0_25 = arith.constant 0 : index
    %44 = vector.load %arg4[%c3, %c0_24, %c0_25] : memref<4x32x32xbf16, #tpu.memory_space<vmem>>, vector<1x32x32xbf16>
    %45 = vector.shape_cast %44 : vector<1x32x32xbf16> to vector<32x32xbf16>
    %c3_26 = arith.constant 3 : index
    %c0_27 = arith.constant 0 : index
    %46 = vector.load %arg5[%c3_26, %c0_27] : memref<4x32xf32, #tpu.memory_space<vmem>>, vector<1x32xf32>
    %47 = vector.extract_strided_slice %15 {offsets = [0, 0, 0], sizes = [1, 8, 32], strides = [1, 1, 1]} : vector<2x8x32xf32> to vector<1x8x32xf32>
    %48 = vector.shape_cast %47 : vector<1x8x32xf32> to vector<8x32xf32>
    %49 = vector.extract_strided_slice %22 {offsets = [0, 0, 0], sizes = [1, 8, 32], strides = [1, 1, 1]} : vector<2x8x32xf32> to vector<1x8x32xf32>
    %50 = vector.shape_cast %49 : vector<1x8x32xf32> to vector<8x32xf32>
    %51 = vector.extract_strided_slice %29 {offsets = [0, 0, 0], sizes = [1, 8, 32], strides = [1, 1, 1]} : vector<2x8x32xf32> to vector<1x8x32xf32>
    %52 = vector.shape_cast %51 : vector<1x8x32xf32> to vector<8x32xf32>
    %53 = vector.shape_cast %50 : vector<8x32xf32> to vector<1x8x32xf32>
    %54 = vector.broadcast %53 : vector<1x8x32xf32> to vector<4x8x32xf32>
    %55 = vector.broadcast %43 : vector<4x1x32xf32> to vector<4x8x32xf32>
    %56 = arith.mulf %54, %55 : vector<4x8x32xf32>
    %57 = vector.shape_cast %56 : vector<4x8x32xf32> to vector<32x32xf32>
    %58 = arith.truncf %57 : vector<32x32xf32> to vector<32x32xbf16>
    %59 = arith.truncf %48 : vector<8x32xf32> to vector<8x32xbf16>
    %cst_28 = arith.constant dense<0.000000e+00> : vector<32x8xf32>
    %60 = tpu.matmul %58, %59, %cst_28 {dimension_numbers = #tpu.dot_dimension_numbers<[1], [1], [0], [0], [0, 0, 1, 0], [], []>} : vector<32x32xbf16>, vector<8x32xbf16>, vector<32x8xf32> -> vector<32x8xf32>
    %cst_29 = arith.constant dense<0xFF800000> : vector<32xf32>
    %61 = vector.multi_reduction <maximumf>, %60, %cst_29 [1] : vector<32x8xf32> to vector<32xf32>
    %62 = vector.shape_cast %61 : vector<32xf32> to vector<32x1xf32>
    %63 = vector.broadcast %62 : vector<32x1xf32> to vector<32x8xf32>
    %64 = arith.subf %60, %63 : vector<32x8xf32>
    %65 = math.exp %64 : vector<32x8xf32>
    %cst_30 = arith.constant dense<0.000000e+00> : vector<32xf32>
    %66 = vector.multi_reduction <add>, %65, %cst_30 [1] : vector<32x8xf32> to vector<32xf32>
    %67 = vector.shape_cast %66 : vector<32xf32> to vector<32x1xf32>
    %68 = tpu.reciprocal %67 {approx = true} : vector<32x1xf32> -> vector<32x1xf32>
    %69 = vector.broadcast %68 : vector<32x1xf32> to vector<32x8xf32>
    %70 = arith.mulf %65, %69 : vector<32x8xf32>
    %71 = arith.truncf %70 : vector<32x8xf32> to vector<32x8xbf16>
    %72 = arith.truncf %52 : vector<8x32xf32> to vector<8x32xbf16>
    %cst_31 = arith.constant dense<0.000000e+00> : vector<32x32xf32>
    %73 = tpu.matmul %71, %72, %cst_31 {dimension_numbers = #tpu.dot_dimension_numbers<[1], [0], [0], [1], [0, 0, 1, 1], [], []>} : vector<32x8xbf16>, vector<8x32xbf16>, vector<32x32xf32> -> vector<32x32xf32>
    %74 = vector.shape_cast %73 : vector<32x32xf32> to vector<4x8x32xf32>
    %75 = vector.broadcast %43 : vector<4x1x32xf32> to vector<4x8x32xf32>
    %76 = arith.mulf %74, %75 : vector<4x8x32xf32>
    %77 = vector.shape_cast %76 : vector<4x8x32xf32> to vector<32x32xf32>
    %78 = arith.truncf %77 : vector<32x32xf32> to vector<32x32xbf16>
    %cst_32 = arith.constant dense<0.000000e+00> : vector<32x32xf32>
    %79 = tpu.matmul %78, %45, %cst_32 {dimension_numbers = #tpu.dot_dimension_numbers<[1], [0], [0], [1], [0, 0, 1, 1], [], []>} : vector<32x32xbf16>, vector<32x32xbf16>, vector<32x32xf32> -> vector<32x32xf32>
    %80 = vector.shape_cast %79 : vector<32x32xf32> to vector<4x8x32xf32>
    %cst_33 = arith.constant dense<0.000000e+00> : vector<8x32xf32>
    %81 = vector.multi_reduction <add>, %80, %cst_33 [0] : vector<4x8x32xf32> to vector<8x32xf32>
    %82 = vector.broadcast %46 : vector<1x32xf32> to vector<8x32xf32>
    %83 = arith.addf %81, %82 : vector<8x32xf32>
    %c0_34 = arith.constant 0 : index
    %c0_35 = arith.constant 0 : index
    %c0_36 = arith.constant 0 : index
    %84 = vector.load %arg6[%c0_34, %c0_35, %c0_36] : memref<2x8x32xf32, #tpu.memory_space<vmem>>, vector<1x8x32xf32>
    %85 = vector.shape_cast %84 : vector<1x8x32xf32> to vector<8x32xf32>
    %86 = vector.shape_cast %83 : vector<8x32xf32> to vector<1x8x32xf32>
    tpu.vector_store %arg6[%c0_34, %c0_35, %c0_36], %86 {strides = array<i32>} : memref<2x8x32xf32, #tpu.memory_space<vmem>>, vector<1x8x32xf32>,
    %87 = vector.extract_strided_slice %15 {offsets = [1, 0, 0], sizes = [1, 8, 32], strides = [1, 1, 1]} : vector<2x8x32xf32> to vector<1x8x32xf32>
    %88 = vector.shape_cast %87 : vector<1x8x32xf32> to vector<8x32xf32>
    %89 = vector.extract_strided_slice %22 {offsets = [1, 0, 0], sizes = [1, 8, 32], strides = [1, 1, 1]} : vector<2x8x32xf32> to vector<1x8x32xf32>
    %90 = vector.shape_cast %89 : vector<1x8x32xf32> to vector<8x32xf32>
    %91 = vector.extract_strided_slice %29 {offsets = [1, 0, 0], sizes = [1, 8, 32], strides = [1, 1, 1]} : vector<2x8x32xf32> to vector<1x8x32xf32>
    %92 = vector.shape_cast %91 : vector<1x8x32xf32> to vector<8x32xf32>
    %93 = vector.shape_cast %90 : vector<8x32xf32> to vector<1x8x32xf32>
    %94 = vector.broadcast %93 : vector<1x8x32xf32> to vector<4x8x32xf32>
    %95 = vector.broadcast %43 : vector<4x1x32xf32> to vector<4x8x32xf32>
    %96 = arith.mulf %94, %95 : vector<4x8x32xf32>
    %97 = vector.shape_cast %96 : vector<4x8x32xf32> to vector<32x32xf32>
    %98 = arith.truncf %97 : vector<32x32xf32> to vector<32x32xbf16>
    %99 = arith.truncf %88 : vector<8x32xf32> to vector<8x32xbf16>
    %cst_37 = arith.constant dense<0.000000e+00> : vector<32x8xf32>
    %100 = tpu.matmul %98, %99, %cst_37 {dimension_numbers = #tpu.dot_dimension_numbers<[1], [1], [0], [0], [0, 0, 1, 0], [], []>} : vector<32x32xbf16>, vector<8x32xbf16>, vector<32x8xf32> -> vector<32x8xf32>
    %cst_38 = arith.constant dense<0xFF800000> : vector<32xf32>
    %101 = vector.multi_reduction <maximumf>, %100, %cst_38 [1] : vector<32x8xf32> to vector<32xf32>
    %102 = vector.shape_cast %101 : vector<32xf32> to vector<32x1xf32>
    %103 = vector.broadcast %102 : vector<32x1xf32> to vector<32x8xf32>
    %104 = arith.subf %100, %103 : vector<32x8xf32>
    %105 = math.exp %104 : vector<32x8xf32>
    %cst_39 = arith.constant dense<0.000000e+00> : vector<32xf32>
    %106 = vector.multi_reduction <add>, %105, %cst_39 [1] : vector<32x8xf32> to vector<32xf32>
    %107 = vector.shape_cast %106 : vector<32xf32> to vector<32x1xf32>
    %108 = tpu.reciprocal %107 {approx = true} : vector<32x1xf32> -> vector<32x1xf32>
    %109 = vector.broadcast %108 : vector<32x1xf32> to vector<32x8xf32>
    %110 = arith.mulf %105, %109 : vector<32x8xf32>
    %111 = arith.truncf %110 : vector<32x8xf32> to vector<32x8xbf16>
    %112 = arith.truncf %92 : vector<8x32xf32> to vector<8x32xbf16>
    %cst_40 = arith.constant dense<0.000000e+00> : vector<32x32xf32>
    %113 = tpu.matmul %111, %112, %cst_40 {dimension_numbers = #tpu.dot_dimension_numbers<[1], [0], [0], [1], [0, 0, 1, 1], [], []>} : vector<32x8xbf16>, vector<8x32xbf16>, vector<32x32xf32> -> vector<32x32xf32>
    %114 = vector.shape_cast %113 : vector<32x32xf32> to vector<4x8x32xf32>
    %115 = vector.broadcast %43 : vector<4x1x32xf32> to vector<4x8x32xf32>
    %116 = arith.mulf %114, %115 : vector<4x8x32xf32>
    %117 = vector.shape_cast %116 : vector<4x8x32xf32> to vector<32x32xf32>
    %118 = arith.truncf %117 : vector<32x32xf32> to vector<32x32xbf16>
    %cst_41 = arith.constant dense<0.000000e+00> : vector<32x32xf32>
    %119 = tpu.matmul %118, %45, %cst_41 {dimension_numbers = #tpu.dot_dimension_numbers<[1], [0], [0], [1], [0, 0, 1, 1], [], []>} : vector<32x32xbf16>, vector<32x32xbf16>, vector<32x32xf32> -> vector<32x32xf32>
    %120 = vector.shape_cast %119 : vector<32x32xf32> to vector<4x8x32xf32>
    %cst_42 = arith.constant dense<0.000000e+00> : vector<8x32xf32>
    %121 = vector.multi_reduction <add>, %120, %cst_42 [0] : vector<4x8x32xf32> to vector<8x32xf32>
    %122 = vector.broadcast %46 : vector<1x32xf32> to vector<8x32xf32>
    %123 = arith.addf %121, %122 : vector<8x32xf32>
    %c1_43 = arith.constant 1 : index
    %c0_44 = arith.constant 0 : index
    %c0_45 = arith.constant 0 : index
    %124 = vector.load %arg6[%c1_43, %c0_44, %c0_45] : memref<2x8x32xf32, #tpu.memory_space<vmem>>, vector<1x8x32xf32>
    %125 = vector.shape_cast %124 : vector<1x8x32xf32> to vector<8x32xf32>
    %126 = vector.shape_cast %123 : vector<8x32xf32> to vector<1x8x32xf32>
    tpu.vector_store %arg6[%c1_43, %c0_44, %c0_45], %126 {strides = array<i32>} : memref<2x8x32xf32, #tpu.memory_space<vmem>>, vector<1x8x32xf32>,
    return
  }
  func.func @transform_0(%arg0: i32) -> (i32, i32, i32) {
    %c0_i32 = arith.constant 0 : i32
    %c0_i32_0 = arith.constant 0 : i32
    %c0_i32_1 = arith.constant 0 : i32
    return %arg0, %c0_i32, %c0_i32_0 : i32, i32, i32
  }
  func.func @transform_1(%arg0: i32) -> (i32, i32, i32) {
    %c0_i32 = arith.constant 0 : i32
    %c0_i32_0 = arith.constant 0 : i32
    %c0_i32_1 = arith.constant 0 : i32
    return %arg0, %c0_i32, %c0_i32_0 : i32, i32, i32
  }
  func.func @transform_2(%arg0: i32) -> (i32, i32, i32) {
    %c0_i32 = arith.constant 0 : i32
    %c0_i32_0 = arith.constant 0 : i32
    %c0_i32_1 = arith.constant 0 : i32
    return %arg0, %c0_i32, %c0_i32_0 : i32, i32, i32
  }
  func.func @transform_3(%arg0: i32) -> (i32, i32, i32) {
    %c0_i32 = arith.constant 0 : i32
    %c0_i32_0 = arith.constant 0 : i32
    %c0_i32_1 = arith.constant 0 : i32
    %c0_i32_2 = arith.constant 0 : i32
    return %c0_i32, %c0_i32_0, %c0_i32_1 : i32, i32, i32
  }
  func.func @transform_4(%arg0: i32) -> (i32, i32) {
    %c0_i32 = arith.constant 0 : i32
    %c0_i32_0 = arith.constant 0 : i32
    %c0_i32_1 = arith.constant 0 : i32
    return %c0_i32, %c0_i32_0 : i32, i32
  }
  func.func @transform_5(%arg0: i32) -> (i32, i32, i32) {
    %c0_i32 = arith.constant 0 : i32
    %c0_i32_0 = arith.constant 0 : i32
    %c0_i32_1 = arith.constant 0 : i32
    return %arg0, %c0_i32, %c0_i32_0 : i32, i32, i32
  }
}

</mosaic_0001>

<bundles_post_ra>
// kernel: tpu_custom_call.1
= control target key start
LH: loop header
LB: loop body
LE: loop exit
PB: predicated region body
PF: predicated region fallthrough
CT: control target
= control target key end

     0   :  { %10 = vsyncpa [#allocation3], 0  ;;  %s1386_s0 = inlined_call_operand.hbm [shape: f32[2,8,32], index: 0, kind: input, shape index: {}]   ;;  %s1387_s1 = inlined_call_operand.hbm [shape: f32[2,8,32], index: 1, kind: input, shape index: {}]   ;;  %s1388_s2 = inlined_call_operand.hbm [shape: f32[2,8,32], index: 2, kind: input, shape index: {}]   ;;  %s1389_s3 = inlined_call_operand.hbm [shape: bf16[4,32,32], index: 3, kind: input, shape index: {}]   ;;  %s1390_s4 = inlined_call_operand.vmem [shape: f32[4,32], index: 4, kind: input, shape index: {}]   ;;  %s1391_s5 = inlined_call_operand.hbm [shape: f32[2,8,32], index: 5, kind: output, shape index: {}]  }
   0x1   :  { %11 = vsyncpa [#allocation6], 0 }
   0x2   :  { %12 = vsyncpa [#allocation9], 0 }
   0x3   :  { %13 = vsyncpa [#allocation4], 0  ;;  %s1160_s18 = smov [#allocation5]   ;;  %s1161_s20 = smov [#allocation2]  }
   0x4   :  { %s31_s19 = sshll.u32 %s1160_s18, 4  ;;  %s19_s21 = sshll.u32 %s1161_s20, 4  ;;  %s32_s19 = int_to_ptr.vmem [resolvable:$true] %s31_s19  ;;  %s1202_s21 = int_to_ptr.vmem [resolvable:$true] %s19_s21 }
   0x5   :  { %s1042_s24 = scalar_lea.hbm %s1387_s1, 256 }
   0x6   :  { %p1043_p0 = scmp.ne.s32.totalorder %s1387_s1, %s1042_s24  ;;  %p1046_p1 = scmp.lt.u32.totalorder %s1042_s24, %s1387_s1 }
   0x8   :  { %p1048_p2 = pnand %p1046_p1, %p1043_p0 }
   0xa   :  { %1051 = shalt.err (!%p1048_p2)
}
   0xb   :  { %s1052_s29 = scalar_lea.vmem %s32_s19, 256  ;;  %p1057_p4 = scmp.lt.s32.totalorder %s32_s19, %s32_s19 }
   0xc   :  { %p1053_p3 = scmp.ne.s32.totalorder %s32_s19, %s1052_s29  ;;  %p1058_p5 = scmp.lt.s32.totalorder %s1052_s29, %s1052_s29 }
   0xe   :  { %p1059_p6 = por %p1058_p5, %p1057_p4 }
  0x10   :  { %p1060_p7 = pnand %p1059_p6, %p1053_p3 }
  0x12   :  { %1063 = shalt.err (!%p1060_p7)
}
  0x13   :  { %s1162_s30 = smov 128   ;;  %s1163_s6 = smov 8  }
  0x14   :  { %37 = dma.hbm_to_vmem [thread:$0]  %s1387_s1, 256, %s32_s19, [#allocation6], %s1162_s30, %s1162_s30, %s1163_s6  }
  0x15   :  { %s1064_s11 = scalar_lea.hbm %s1386_s0, 256 }
  0x16   :  { %p1065_p8 = scmp.ne.s32.totalorder %s1386_s0, %s1064_s11  ;;  %p1068_p9 = scmp.lt.u32.totalorder %s1064_s11, %s1386_s0 }
  0x18   :  { %p1070_p10 = pnand %p1068_p9, %p1065_p8 }
  0x1a   :  { %1073 = shalt.err (!%p1070_p10)
}
  0x1b   :  { %s1074_s16 = scalar_lea.vmem %s1202_s21, 256  ;;  %p1079_p12 = scmp.lt.s32.totalorder %s1202_s21, %s1202_s21 }
  0x1c   :  { %p1075_p11 = scmp.ne.s32.totalorder %s1202_s21, %s1074_s16  ;;  %p1080_p13 = scmp.lt.s32.totalorder %s1074_s16, %s1074_s16 }
  0x1e   :  { %p1081_p0 = por %p1080_p13, %p1079_p12 }
  0x20   :  { %p1082_p1 = pnand %p1081_p0, %p1075_p11 }
  0x22   :  { %1085 = shalt.err (!%p1082_p1)
}
  0x23   :  { %25 = dma.hbm_to_vmem [thread:$0]  %s1386_s0, 256, %s1202_s21, [#allocation3], %s1162_s30, %s1162_s30, %s1163_s6  }
  0x24   :  { %s1164_s18 = smov [#allocation7]   ;;  %s1165_s20 = smov [#allocation8]  }
  0x25   :  { %s43_s19 = sshll.u32 %s1164_s18, 4  ;;  %s55_s22 = sshll.u32 %s1165_s20, 4  ;;  %s44_s19 = int_to_ptr.vmem [resolvable:$true] %s43_s19  ;;  %s1239_s22 = int_to_ptr.vmem [resolvable:$true] %s55_s22 }
  0x26   :  { %s1086_s25 = scalar_lea.hbm %s1388_s2, 256 }
  0x27   :  { %p1087_p2 = scmp.ne.s32.totalorder %s1388_s2, %s1086_s25  ;;  %p1090_p3 = scmp.lt.u32.totalorder %s1086_s25, %s1388_s2 }
  0x29   :  { %p1092_p4 = pnand %p1090_p3, %p1087_p2 }
  0x2b   :  { %1095 = shalt.err (!%p1092_p4)
}
  0x2c   :  { %s1096_s0 = scalar_lea.vmem %s44_s19, 256  ;;  %p1101_p6 = scmp.lt.s32.totalorder %s44_s19, %s44_s19 }
  0x2d   :  { %p1097_p5 = scmp.ne.s32.totalorder %s44_s19, %s1096_s0  ;;  %p1102_p7 = scmp.lt.s32.totalorder %s1096_s0, %s1096_s0 }
  0x2f   :  { %p1103_p8 = por %p1102_p7, %p1101_p6 }
  0x31   :  { %p1104_p9 = pnand %p1103_p8, %p1097_p5 }
  0x33   :  { %1107 = shalt.err (!%p1104_p9)
}
  0x34   :  { %49 = dma.hbm_to_vmem [thread:$0]  %s1388_s2, 256, %s44_s19, [#allocation6], %s1162_s30, %s1162_s30, %s1163_s6  }
  0x35   :  { %s1108_s10 = scalar_lea.hbm %s1389_s3, 1024 }
  0x36   :  { %p1109_p10 = scmp.ne.s32.totalorder %s1389_s3, %s1108_s10  ;;  %p1112_p11 = scmp.lt.u32.totalorder %s1108_s10, %s1389_s3 }
  0x38   :  { %p1114_p12 = pnand %p1112_p11, %p1109_p10 }
  0x3a   :  { %1117 = shalt.err (!%p1114_p12)
}
  0x3b   :  { %s1118_s15 = scalar_lea.vmem %s1239_s22, 1024  ;;  %p1123_p0 = scmp.lt.s32.totalorder %s1239_s22, %s1239_s22 }
  0x3c   :  { %p1119_p13 = scmp.ne.s32.totalorder %s1239_s22, %s1118_s15  ;;  %p1124_p1 = scmp.lt.s32.totalorder %s1118_s15, %s1118_s15 }
  0x3e   :  { %p1125_p2 = por %p1124_p1, %p1123_p0 }
  0x40   :  { %p1126_p3 = pnand %p1125_p2, %p1119_p13 }
  0x42   :  { %1129 = shalt.err (!%p1126_p3)
}
  0x43   :  { %s1166_s2 = smov 64   ;;  %s1167_s16 = smov 4  }
  0x44   :  { %61 = dma.hbm_to_vmem [thread:$0]  %s1389_s3, 1024, %s1239_s22, [#allocation9], %s1166_s2, %s1166_s2, %s1167_s16  }
  0x45   :  { %1152 = dma.done.wait [#allocation3], 256  }
  0x46   :  { %1153 = vsyncadd [#allocation3], 4294967040 }
  0x47   :  { %1154 = dma.done.wait [#allocation6], 512  }
  0x48   :  { %1155 = vsyncadd [#allocation6], 4294966784 }
  0x49   :  { %1156 = dma.done.wait [#allocation9], 1024  }
  0x4a   :  { %1157 = vsyncadd [#allocation9], 4294966272  ;;  %v1168_v0 = vmov 0.0   ;;  %vm1169_vm0 = vmmov 0   ;;  %v1002_v1 = vld [vmem:[#allocation8] sm:$0xff]   ;;  %v1003_v2 = vld [vmem:[#allocation8 + $0x10] sm:$0xff]   ;;  %v284_v16 = vlaneseq }
  0x4b   :  { %922 = vmatprep.subr.bf16.mxu0 %v1168_v0  ;;  %930 = vmatprep.subr.bf16.mxu1 %v1168_v0  ;;  %v1004_v3 = vld [vmem:[#allocation8 + $0x8] sm:$0xff]   ;;  %v77_v4 = vld [vmem:[#allocation2] sm:$0xff]  ;;  %v78_v5 = vld [vmem:[#allocation2 + $0x8] sm:$0xff]  ;;  %vm107_vm1 = vcmask 261120   ;;  %v1170_v22 = vmov 1966171168  }
  0x4c   :  { %926 = vmatprep.mubr.msk.bf16.mxu0 %vm1169_vm0, %v1168_v0  ;;  %934 = vmatprep.mubr.msk.bf16.mxu1 %vm1169_vm0, %v1168_v0  ;;  %v1005_v6 = vld [vmem:[#allocation8 + $0x18] sm:$0xff]   ;;  %v79_v7 = vpack.c.bf16 %v78_v5, %v77_v4  ;;  %v1006_v8 = vld [vmem:[#allocation8 + $0x20] sm:$0xff]   ;;  %v81_v10 = vld [vmem:[#allocation5 + $0x8] sm:$0xff]  ;;  %v287_v17 = vshrl.u32 %v284_v16, 7  ;;  %v285_v19 = vand.u32 127, %v284_v16  ;;  %v298_v23 = vunpack.c.l.s4 %v1170_v22 }
  0x4d   :  { %923 = vmatpush3.bf16.msra.mxu0 %v1002_v1  ;;  %931 = vmatpush3.bf16.msra.mxu1 %v1003_v2  ;;  %v80_v9 = vld [vmem:[#allocation5] sm:$0xff]  ;;  %v1007_v12 = vld [vmem:[#allocation8 + $0x28] sm:$0xff]   ;;  %v83_v13 = vld [vmem:[#allocation7] sm:$0xff]  ;;  %vm466_vm5 = vcmask 1043456   ;;  %vm412_vm6 = vcmask 64512  }
  0x4e   :  { %924 = vmatprep.subr.bf16.mxu0 %v1168_v0  ;;  %932 = vmatprep.subr.bf16.mxu1 %v1168_v0  ;;  %v82_v11 = vpack.c.bf16 %v81_v10, %v80_v9  ;;  %v84_v14 = vld [vmem:[#allocation7 + $0x8] sm:$0xff]  ;;  %v290_v18 = vadd.s32 1, %v287_v17  ;;  %v288_v20 = vmul.u32 8, %v287_v17  ;;  %v299_v24 = vunpack.c.0.s8 %v298_v23  ;;  %v865_v34 = vld [vmem:[%s1390_s4] ss:$0 sm:$0xff] }
  0x4f   :  { %v85_v15 = vpack.c.bf16 %v84_v14, %v83_v13  ;;  %v329_v31 = vsub.s32 0, %v287_v17  ;;  %v869_v35 = vld [vmem:[%s1390_s4 + $0x1] ss:$0 sm:$0xff]  ;;  %v873_v57 = vld [vmem:[%s1390_s4 + $0x2] ss:$0 sm:$0xff] }
  0x50   :  { %v291_v21 = vmul.u32 8, %v290_v18  ;;  %vm289_vm2 = vcmp.ge.s32.totalorder %v285_v19, %v288_v20  ;;  %v302_v25 = vsub.s32 %v299_v24, %v287_v17 }
  0x51   :  { %925 = vmatpush3.bf16.msra.mxu0 %v1004_v3  ;;  %933 = vmatpush3.bf16.msra.mxu1 %v1005_v6 }
  0x52   :  { %938 = vmatprep.subr.bf16.mxu0 %v1168_v0  ;;  %vm292_vm3 = vcmp.lt.s32.totalorder %v285_v19, %v291_v21 }
  0x53   :  { %vm293_vm4 = vmand %vm289_vm2, %vm292_vm3 }
  0x54   :  { %927 = vmatmul.mubr.msk.bf16.vlgmr.msra.gmra.mrb[0].mxu0 %vm107_vm1, %v79_v7  ;;  %935 = vmatmul.mubr.msk.bf16.vlgmr.msra.gmra.mrb[0].mxu1 %vm107_vm1, %v82_v11  ;;  %v877_v26 = vsel %vm293_vm4, 1.0, %v1168_v0 }
  0x55   :  { %939 = vmatpush3.bf16.msra.mxu0 %v1006_v8  ;;  %942 = vmatprep.mubr.msk.bf16.mxu0 %vm1169_vm0, %v1168_v0  ;;  %v303_v27 = vrot.slane %v877_v26, %v302_v25 }
  0x56   :  { %940 = vmatprep.subr.bf16.mxu0 %v1168_v0 }
  0x57   :  { %v304_v28 = vcombine.high %v303_v27, %v303_v27  ;;  %v311_v29 = vrot.slane %v303_v27, %v302_v25 }
  0x59   :  { %941 = vmatpush3.bf16.msra.mxu0 %v1007_v12  ;;  %v318_v30 = vrot.slane %v304_v28, %v302_v25  ;;  %v319_v32 = vcombine.high %v311_v29, %v311_v29  ;;  %v1285_v37 = vrot.slane %v311_v29, %v329_v31 }
  0x5b   :  { %v320_v33 = vcombine.high %v318_v30, %v318_v30  ;;  %v1287_v38 = vrot.slane %v318_v30, %v329_v31  ;;  %v1289_v42 = vrot.slane %v319_v32, %v329_v31 }
  0x5c   :  { %943 = vmatmul.mubr.msk.bf16.vlgmr.msra.gmra.mrb[4].mxu0 %vm107_vm1, %v85_v15 }
  0x5d   :  { %v1291_v43 = vrot.slane %v320_v33, %v329_v31  ;;  %v1008_v31 = vld [vmem:[#allocation8 + $0x30] sm:$0xff]  }
 0x127   :  { %v145_v36 = vpop.f32.mrb[0].mxu0  ;;  %v211_v41 = vpop.f32.mrb[0].mxu1 }
 0x128   :  { %v146_v39 = vadd.f32 %v865_v34, %v145_v36  ;;  %v928_v40 = vpop.f32.mrb[1].mxu0  ;;  %v212_v45 = vadd.f32 %v869_v35, %v211_v41  ;;  %v936_v46 = vpop.f32.mrb[1].mxu1 }
 0x129   :  { %v148_v44 = vpop.f32.mrb[2].mxu0  ;;  %v214_v49 = vpop.f32.mrb[2].mxu1 }
 0x12a   :  { %v353_v47 = vpack.c.bf16 %v146_v39, %v146_v39  ;;  %v929_v48 = vpop.f32.mrb[3].mxu0  ;;  %v347_v50 = vmul.f32 %v1285_v37, %v212_v45  ;;  %v348_v51 = vmul.f32 %v1287_v38, %v212_v45  ;;  %v937_v52 = vpop.f32.mrb[3].mxu1  ;;  %v349_v54 = vmul.f32 %v1289_v42, %v212_v45 }
 0x12b   :  { %v350_v55 = vmul.f32 %v1291_v43, %v212_v45  ;;  %v1298_v56 = vadd.f32 %v869_v35, %v214_v49  ;;  %v149_v60 = vadd.f32 %v865_v34, %v148_v44  ;;  %v1009_v35 = vld [vmem:[#allocation8 + $0x38] sm:$0xff]  }
 0x12c   :  { %v361_v53 = vsel %vm107_vm1, %v353_v47, 0  ;;  %986 = vmatprep.subr.msk.bf16.mxu1 %vm107_vm1, %v353_v47  ;;  %v351_v58 = vpack.c.bf16 %v348_v51, %v347_v50 }
 0x12d   :  { %947 = vmatpush3.bf16.xpose.msra.mxu1 %v361_v53  ;;  %v352_v61 = vpack.c.bf16 %v350_v55, %v349_v54  ;;  %v1305_v1 = vpack.c.bf16 %v149_v60, %v149_v60  ;;  %v605_v52 = vmul.f32 %v1285_v37, %v1298_v56  ;;  %v606_v53 = vmul.f32 %v1287_v38, %v1298_v56 }
 0x12e   :  { %948 = vmatprep.mubr.msk.bf16.mxu1 %vm107_vm1, %v351_v58  ;;  %958 = vmatprep.subr.bf16.mxu1 %v1008_v31  ;;  %v607_v60 = vmul.f32 %v1289_v42, %v1298_v56 }
 0x12f   :  { %v277_v59 = vpop.f32.mrb[4].mxu0  ;;  %v609_v58 = vpack.c.bf16 %v606_v53, %v605_v52 }
 0x130   :  { %v278_v62 = vadd.f32 %v873_v57, %v277_v59  ;;  %v944_v63 = vpop.f32.mrb[5].mxu0  ;;  %v619_v59 = vsel %vm107_vm1, %v1305_v1, 0 }
 0x131   :  { %v280_v32 = vpop.f32.mrb[6].mxu0 }
 0x132   :  { %v459_v0 = vpack.c.bf16 %v278_v62, %v278_v62  ;;  %v945_v33 = vpop.f32.mrb[7].mxu0  ;;  %v281_v34 = vadd.f32 %v873_v57, %v280_v32 }
 0x134   :  { %v468_v2 = vsel %vm466_vm5, %v459_v0, 0  ;;  %949 = vmatmul.mubr.msk.bf16.vlgmr.msra.gmra.mrb[4].mxu1 %vm107_vm1, %v352_v61  ;;  %987 = vmatprep.subr.msk.bf16.mxu0 %vm466_vm5, %v459_v0  ;;  %v716_v36 = vpack.c.bf16 %v281_v34, %v281_v34  ;;  %v608_v61 = vmul.f32 %v1291_v43, %v1298_v56 }
 0x135   :  { %953 = vmatpush3.bf16.msra.mxu0 %v468_v2  ;;  %959 = vmatpush3.bf16.msra.mxu1 %v1008_v31 }
 0x136   :  { %988 = vmatprep.subr.msk.bf16.mxu0 %vm107_vm1, %v1305_v1  ;;  %960 = vmatprep.subr.bf16.mxu1 %v1009_v35  ;;  %v610_v62 = vpack.c.bf16 %v608_v61, %v607_v60 }
 0x139   :  { %961 = vmatpush3.bf16.msra.mxu1 %v1009_v35 }
 0x13a   :  { %989 = vmatprep.subr.msk.bf16.mxu1 %vm466_vm5, %v716_v36 }
 0x207   :  { %v950_v3 = vpop.f32.mrb[4].mxu1 }
 0x208   :  { %v397_v4 = vpop.f32.mrb[5].mxu1  ;;  %v419_v5 = vsel %vm412_vm6, %v950_v3, -inf }
 0x209   :  { %420 = vmax.xlane.f32.xlu1 %v419_v5  ;;  %v951_v6 = vpop.f32.mrb[6].mxu1  ;;  %v413_v7 = vsel %vm412_vm6, %v397_v4, -inf }
 0x20a   :  { %414 = vmax.xlane.f32.xlu0 %v413_v7  ;;  %v400_v8 = vpop.f32.mrb[7].mxu1  ;;  %v422_v9 = vsel %vm412_vm6, %v951_v6, -inf }
 0x20b   :  { %v416_v10 = vsel %vm412_vm6, %v400_v8, -inf }
 0x20d   :  { %423 = vmax.xlane.f32.xlu1 %v422_v9  ;;  %v724_v9 = vsel %vm466_vm5, %v716_v36, 0 }
 0x20e   :  { %417 = vmax.xlane.f32.xlu0 %v416_v10 }
 0x296   :  { %v421_v11 = vpop.xlane.xlu1 %420 }
 0x297   :  { %v427_v12 = vsub.f32 %v950_v3, %v421_v11  ;;  %v415_v13 = vpop.xlane.xlu0 %414 }
 0x298   :  { %v425_v14 = vsub.f32 %v397_v4, %v415_v13 }
 0x299   :  { %v433_v15 = vmul.f32 1.442695, %v427_v12 }
 0x29a   :  { %v429_v16 = vmul.f32 1.442695, %v425_v14  ;;  %v424_v17 = vpop.xlane.xlu1 %423 }
 0x29b   :  { %v428_v18 = vsub.f32 %v951_v6, %v424_v17  ;;  %v418_v19 = vpop.xlane.xlu0 %417 }
 0x29c   :  { %1010 = vpow2.f32 %v429_v16  ;;  %v426_v20 = vsub.f32 %v400_v8, %v418_v19 }
 0x29d   :  { %1012 = vpow2.f32 %v433_v15  ;;  %v435_v21 = vmul.f32 1.442695, %v428_v18 }
 0x29e   :  { %v431_v22 = vmul.f32 1.442695, %v426_v20 }
 0x2a0   :  { %1014 = vpow2.f32 %v431_v22 }
 0x2a1   :  { %1016 = vpow2.f32 %v435_v21 }
 0x2a6   :  { %v1011_v23 = vpop.eup %1010 }
 0x2a7   :  { %v437_v24 = vsel %vm412_vm6, %v1011_v23, 0.0  ;;  %v1013_v25 = vpop.eup %1012 }
 0x2a8   :  { %438 = vadd.xlane.f32.xlu0 %v437_v24  ;;  %v443_v27 = vsel %vm412_vm6, %v1013_v25, 0.0 }
 0x2aa   :  { %v1015_v26 = vpop.eup %1014 }
 0x2ab   :  { %v440_v28 = vsel %vm412_vm6, %v1015_v26, 0.0  ;;  %v1017_v29 = vpop.eup %1016 }
 0x2ac   :  { %444 = vadd.xlane.f32.xlu0 %v443_v27  ;;  %441 = vadd.xlane.f32.xlu1 %v440_v28  ;;  %v446_v30 = vsel %vm412_vm6, %v1017_v29, 0.0 }
 0x2b0   :  { %447 = vadd.xlane.f32.xlu1 %v446_v30 }
 0x335   :  { %v439_v39 = vpop.xlane.xlu0 %438 }
 0x336   :  { %1018 = vrcp.f32 %v439_v39 }
 0x339   :  { %v442_v40 = vpop.xlane.xlu1 %441  ;;  %v445_v41 = vpop.xlane.xlu0 %444 }
 0x33a   :  { %1020 = vrcp.f32 %v442_v40 }
 0x33b   :  { %1022 = vrcp.f32 %v445_v41 }
 0x33d   :  { %v448_v44 = vpop.xlane.xlu1 %447 }
 0x33e   :  { %1024 = vrcp.f32 %v448_v44 }
 0x340   :  { %v1019_v45 = vpop.eup %1018 }
 0x341   :  { %v453_v47 = vmul.f32 %v1019_v45, %v1011_v23 }
 0x344   :  { %v1021_v46 = vpop.eup %1020 }
 0x345   :  { %v454_v48 = vmul.f32 %v1021_v46, %v1015_v26  ;;  %v1023_v49 = vpop.eup %1022 }
 0x346   :  { %v455_v54 = vmul.f32 %v1023_v49, %v1013_v25 }
 0x347   :  { %v457_v50 = vpack.c.bf16 %v454_v48, %v453_v47 }
 0x348   :  { %v1025_v51 = vpop.eup %1024 }
 0x349   :  { %v456_v55 = vmul.f32 %v1025_v51, %v1017_v29  ;;  %954 = vmatprep.mubr.msk.bf16.mxu0 %vm412_vm6, %v457_v50  ;;  %v886_v51 = vld [vmem:[%s1390_s4 + $0x3] ss:$0 sm:$0xff]  ;;  %s1171_s4 = smov [#allocation10]  }
 0x34a   :  { %s851_s26 = sshll.u32 %s1171_s4, 4  ;;  %s852_s26 = int_to_ptr.vmem [resolvable:$true] %s851_s26 }
 0x34b   :  { %v458_v57 = vpack.c.bf16 %v456_v55, %v455_v54  ;;  %s1130_s27 = scalar_lea.vmem %s852_s26, 256  ;;  %p1135_p5 = scmp.lt.s32.totalorder %s852_s26, %s852_s26 }
 0x34c   :  { %p1131_p4 = scmp.ne.s32.totalorder %s852_s26, %s1130_s27  ;;  %p1136_p6 = scmp.lt.s32.totalorder %s1130_s27, %s1130_s27 }
 0x34d   :  { %955 = vmatmul.mubr.msk.bf16.vlgmr.msra.gmra.mrb[8].mxu0 %vm412_vm6, %v458_v57 }
 0x34e   :  { %967 = vmatpush3.bf16.xpose.msra.mxu0 %v619_v59  ;;  %968 = vmatprep.mubr.msk.bf16.mxu0 %vm107_vm1, %v609_v58  ;;  %p1137_p7 = por %p1136_p6, %p1135_p5 }
 0x34f   :  { %978 = vmatprep.subr.bf16.mxu0 %v1008_v31 }
 0x350   :  { %p1138_p8 = pnand %p1137_p7, %p1131_p4 }
 0x355   :  { %969 = vmatmul.mubr.msk.bf16.vlgmr.msra.gmra.mrb[12].mxu0 %vm107_vm1, %v610_v62 }
 0x356   :  { %979 = vmatpush3.bf16.msra.mxu0 %v1008_v31 }
 0x357   :  { %980 = vmatprep.subr.bf16.mxu0 %v1009_v35 }
 0x35a   :  { %981 = vmatpush3.bf16.msra.mxu0 %v1009_v35 }
 0x420   :  { %v956_v63 = vpop.f32.mrb[8].mxu0 }
 0x421   :  { %v504_v0 = vpop.f32.mrb[9].mxu0  ;;  %v521_v2 = vmul.f32 %v956_v63, %v1289_v42 }
 0x422   :  { %v957_v1 = vpop.f32.mrb[10].mxu0  ;;  %v519_v5 = vmul.f32 %v504_v0, %v1285_v37 }
 0x423   :  { %v522_v3 = vmul.f32 %v957_v1, %v1291_v43  ;;  %v507_v4 = vpop.f32.mrb[11].mxu0 }
 0x424   :  { %v520_v6 = vmul.f32 %v507_v4, %v1287_v38 }
 0x425   :  { %v524_v56 = vpack.c.bf16 %v522_v3, %v521_v2 }
 0x426   :  { %v523_v7 = vpack.c.bf16 %v520_v6, %v519_v5 }
 0x428   :  { %962 = vmatprep.mubr.msk.bf16.mxu1 %vm107_vm1, %v523_v7  ;;  %v970_v8 = vpop.f32.mrb[12].mxu0 }
 0x429   :  { %963 = vmatmul.mubr.msk.bf16.vlgmr.msra.gmra.mrb[8].mxu1 %vm107_vm1, %v524_v56  ;;  %v655_v10 = vpop.f32.mrb[13].mxu0  ;;  %v676_v15 = vsel %vm412_vm6, %v970_v8, -inf }
 0x42a   :  { %973 = vmatpush3.bf16.msra.mxu1 %v724_v9  ;;  %v971_v11 = vpop.f32.mrb[14].mxu0  ;;  %v670_v12 = vsel %vm412_vm6, %v655_v10, -inf }
 0x42b   :  { %671 = vmax.xlane.f32.xlu0 %v670_v12  ;;  %v658_v13 = vpop.f32.mrb[15].mxu0  ;;  %v679_v16 = vsel %vm412_vm6, %v971_v11, -inf }
 0x42c   :  { %v673_v14 = vsel %vm412_vm6, %v658_v13, -inf }
 0x42d   :  { %674 = vmax.xlane.f32.xlu1 %v673_v14 }
 0x42f   :  { %677 = vmax.xlane.f32.xlu0 %v676_v15 }
 0x431   :  { %680 = vmax.xlane.f32.xlu1 %v679_v16 }
 0x4b8   :  { %v672_v17 = vpop.xlane.xlu0 %671 }
 0x4b9   :  { %v682_v18 = vsub.f32 %v655_v10, %v672_v17 }
 0x4ba   :  { %v675_v19 = vpop.xlane.xlu1 %674 }
 0x4bb   :  { %v686_v20 = vmul.f32 1.442695, %v682_v18  ;;  %v683_v21 = vsub.f32 %v658_v13, %v675_v19 }
 0x4bc   :  { %v678_v22 = vpop.xlane.xlu0 %677 }
 0x4bd   :  { %1026 = vpow2.f32 %v686_v20  ;;  %v688_v23 = vmul.f32 1.442695, %v683_v21  ;;  %v684_v24 = vsub.f32 %v970_v8, %v678_v22 }
 0x4be   :  { %v681_v25 = vpop.xlane.xlu1 %680 }
 0x4bf   :  { %1028 = vpow2.f32 %v688_v23  ;;  %v690_v26 = vmul.f32 1.442695, %v684_v24  ;;  %v685_v27 = vsub.f32 %v971_v11, %v681_v25 }
 0x4c1   :  { %1030 = vpow2.f32 %v690_v26  ;;  %v692_v28 = vmul.f32 1.442695, %v685_v27 }
 0x4c3   :  { %1032 = vpow2.f32 %v692_v28 }
 0x4c7   :  { %v1027_v29 = vpop.eup %1026 }
 0x4c8   :  { %v694_v30 = vsel %vm412_vm6, %v1027_v29, 0.0 }
 0x4c9   :  { %v1029_v31 = vpop.eup %1028  ;;  %695 = vadd.xlane.f32.xlu0 %v694_v30 }
 0x4ca   :  { %v697_v32 = vsel %vm412_vm6, %v1029_v31, 0.0 }
 0x4cb   :  { %v1031_v33 = vpop.eup %1030  ;;  %698 = vadd.xlane.f32.xlu1 %v697_v32 }
 0x4cc   :  { %v700_v34 = vsel %vm412_vm6, %v1031_v33, 0.0 }
 0x4cd   :  { %v1033_v35 = vpop.eup %1032  ;;  %701 = vadd.xlane.f32.xlu0 %v700_v34 }
 0x4ce   :  { %v703_v36 = vsel %vm412_vm6, %v1033_v35, 0.0 }
 0x4cf   :  { %704 = vadd.xlane.f32.xlu1 %v703_v36 }
 0x4fc   :  { %v964_v39 = vpop.f32.mrb[8].mxu1 }
 0x4fd   :  { %v577_v40 = vpop.f32.mrb[9].mxu1  ;;  %v595_v48 = vsel %vm107_vm1, %v964_v39, 0.0 }
 0x4fe   :  { %v965_v41 = vpop.f32.mrb[10].mxu1  ;;  %v592_v45 = vsel %vm107_vm1, %v577_v40, 0.0 }
 0x4ff   :  { %v580_v44 = vpop.f32.mrb[11].mxu1  ;;  %v597_v50 = vsel %vm107_vm1, %v965_v41, 0.0 }
 0x500   :  { %v593_v46 = vsel %vm107_vm1, %v580_v44, 0.0 }
 0x501   :  { %v594_v47 = vadd.f32 %v593_v46, %v592_v45 }
 0x503   :  { %v596_v49 = vadd.f32 %v595_v48, %v594_v47 }
 0x505   :  { %v598_v52 = vadd.f32 %v597_v50, %v596_v49 }
 0x507   :  { %v603_v53 = vadd.f32 %v886_v51, %v598_v52 }
 0x509   :  { %604 = vst.msk [vmem:[#allocation10] sm:$0xff] %vm107_vm1, %v603_v53 }
 0x556   :  { %v696_v54 = vpop.xlane.xlu0 %695 }
 0x557   :  { %1034 = vrcp.f32 %v696_v54 }
 0x558   :  { %v699_v55 = vpop.xlane.xlu1 %698 }
 0x559   :  { %1036 = vrcp.f32 %v699_v55 }
 0x55a   :  { %v702_v57 = vpop.xlane.xlu0 %701 }
 0x55b   :  { %1038 = vrcp.f32 %v702_v57 }
 0x55c   :  { %v705_v58 = vpop.xlane.xlu1 %704 }
 0x55d   :  { %1040 = vrcp.f32 %v705_v58 }
 0x561   :  { %v1035_v59 = vpop.eup %1034 }
 0x562   :  { %v710_v61 = vmul.f32 %v1035_v59, %v1027_v29 }
 0x563   :  { %v1037_v60 = vpop.eup %1036 }
 0x564   :  { %v711_v62 = vmul.f32 %v1037_v60, %v1029_v31 }
 0x565   :  { %v1039_v63 = vpop.eup %1038 }
 0x566   :  { %v714_v0 = vpack.c.bf16 %v711_v62, %v710_v61  ;;  %v712_v2 = vmul.f32 %v1039_v63, %v1031_v33 }
 0x567   :  { %v1041_v1 = vpop.eup %1040 }
 0x568   :  { %v713_v3 = vmul.f32 %v1041_v1, %v1033_v35  ;;  %974 = vmatprep.mubr.msk.bf16.mxu1 %vm412_vm6, %v714_v0 }
 0x56a   :  { %v715_v4 = vpack.c.bf16 %v713_v3, %v712_v2 }
 0x56c   :  { %975 = vmatmul.mubr.msk.bf16.vlgmr.msra.gmra.mrb[12].mxu1 %vm412_vm6, %v715_v4 }
 0x63f   :  { %v976_v5 = vpop.f32.mrb[12].mxu1 }
 0x640   :  { %v760_v6 = vpop.f32.mrb[13].mxu1  ;;  %v777_v7 = vmul.f32 %v976_v5, %v1289_v42 }
 0x641   :  { %v977_v56 = vpop.f32.mrb[14].mxu1  ;;  %v775_v10 = vmul.f32 %v760_v6, %v1285_v37 }
 0x642   :  { %v778_v8 = vmul.f32 %v977_v56, %v1291_v43  ;;  %v763_v9 = vpop.f32.mrb[15].mxu1 }
 0x643   :  { %v776_v11 = vmul.f32 %v763_v9, %v1287_v38 }
 0x644   :  { %v780_v12 = vpack.c.bf16 %v778_v8, %v777_v7 }
 0x645   :  { %v779_v13 = vpack.c.bf16 %v776_v11, %v775_v10 }
 0x647   :  { %982 = vmatprep.mubr.msk.bf16.mxu0 %vm107_vm1, %v779_v13 }
 0x648   :  { %983 = vmatmul.mubr.msk.bf16.vlgmr.msra.gmra.mrb[16].mxu0 %vm107_vm1, %v780_v12 }
 0x71b   :  { %v984_v14 = vpop.f32.mrb[16].mxu0 }
 0x71c   :  { %v821_v15 = vpop.f32.mrb[17].mxu0  ;;  %v839_v19 = vsel %vm107_vm1, %v984_v14, 0.0 }
 0x71d   :  { %v985_v16 = vpop.f32.mrb[18].mxu0  ;;  %v836_v18 = vsel %vm107_vm1, %v821_v15, 0.0 }
 0x71e   :  { %v824_v17 = vpop.f32.mrb[19].mxu0  ;;  %v841_v38 = vsel %vm107_vm1, %v985_v16, 0.0 }
 0x71f   :  { %v837_v42 = vsel %vm107_vm1, %v824_v17, 0.0 }
 0x720   :  { %v838_v43 = vadd.f32 %v837_v42, %v836_v18 }
 0x722   :  { %v840_v37 = vadd.f32 %v839_v19, %v838_v43 }
 0x724   :  { %v842_v20 = vadd.f32 %v841_v38, %v840_v37 }
 0x726   :  { %v843_v21 = vadd.f32 %v886_v51, %v842_v20 }
 0x728   :  { %845 = vst.msk [vmem:[#allocation10 + $0x8] sm:$0xff] %vm107_vm1, %v843_v21 }
 0x729   :  { %1141 = shalt.err (!%p1138_p8)
}
 0x72a   :  { %s1142_s0 = scalar_lea.hbm %s1391_s5, 256 }
 0x72b   :  { %p1143_p9 = scmp.ne.s32.totalorder %s1391_s5, %s1142_s0  ;;  %p1146_p10 = scmp.lt.u32.totalorder %s1142_s0, %s1391_s5 }
 0x72d   :  { %p1148_p11 = pnand %p1146_p10, %p1143_p9 }
 0x72f   :  { %1151 = shalt.err (!%p1148_p11)
}
 0x730   :  { %857 = dma.vmem_to_hbm [thread:$0]  %s852_s26, 256, %s1391_s5, [#allocation4], %s1162_s30, %s1162_s30, %s1163_s6  }
 0x731   :  { %1158 = dma.done.wait [#allocation4], 256  }
 0x732   :  { %1159 = vsyncadd [#allocation4], 4294967040 }
 0x733   :  { %861 = vsyncpa [#allocation3], 1 }
 0x734   :  { %862 = vsyncpa [#allocation6], 1 }
 0x735   :  { %863 = vsyncpa [#allocation9], 1 }
 0x736   :  { %864 = vsyncpa [#allocation4], 1 }

</bundles_post_ra>
